<compile_context>
chip_gen: v6e
topology: v6e:2x2x1
jax: 0.10.0
libtpu: 0.0.40
codegen_flags: <defaults>
</compile_context>

<pallas_src>
import jax
import jax.numpy as jnp
from jax.experimental import pallas as pl
from jax.experimental.pallas import tpu as pltpu

LANE = 128      # vreg lane width
SUBLANE = 8     # f32 sublane count


def _round_up(x, m):
    return (x + m - 1) // m * m


def decode_kernel(x0_ref, h0_ref, c0_ref,
                  w_ih_ref, w_hh_ref, b_gate_ref,
                  w_lin_ref, b_lin_ref,
                  out_ref, h_ref, c_ref,
                  x_s):
    """One grid step = one LSTM cell step + linear projection.

    Grid axis 0 iterates decode time steps sequentially.
      x0_ref:     (Np, Ep)       initial input (read only at t == 0)
      h0_ref:     (Np, Hc)       initial hidden state (read only at t == 0)
      c0_ref:     (Np, Hc)       initial cell state   (read only at t == 0)
      w_ih_ref:   (Ep, 4*Hc)     W_ih^T, padded, per-gate 128-lane blocks
      w_hh_ref:   (Hc, 4*Hc)     W_hh^T, padded, per-gate 128-lane blocks
      b_gate_ref: (1, 4*Hc)      b_ih + b_hh (f32)
      w_lin_ref:  (Hc, Ep)       linear.weight^T, padded
      b_lin_ref:  (1, Ep)        linear.bias (f32)
      out_ref:    (Np, Ep)       per-step output block (rotates with t)
      h_ref:      (Np, Hc)       recurrent hidden carry (constant block -> VMEM resident)
      c_ref:      (Np, Hc)       recurrent cell carry   (constant block -> VMEM resident)
      x_s:        (Np, Ep)       VMEM scratch: autoregressive input carry
    """
    t = pl.program_id(0)
    Hc = h0_ref.shape[-1]

    @pl.when(t == 0)
    def _init():
        x_s[...] = x0_ref[...]
        h_ref[...] = h0_ref[...]
        c_ref[...] = c0_ref[...]

    x = x_s[...]
    h = h_ref[...]
    c = c_ref[...]

    # Two accumulated MXU matmuls (no [x,h] concat scratch, no store->load dep).
    gates = (jnp.dot(x.astype(w_ih_ref.dtype), w_ih_ref[...],
                     preferred_element_type=jnp.float32)
             + jnp.dot(h.astype(w_hh_ref.dtype), w_hh_ref[...],
                       preferred_element_type=jnp.float32)
             + b_gate_ref[...])                              # (Np, 4*Hc), f32

    # 128-lane-aligned static gate slices; PyTorch gate order [i, f, g, o].
    i_g = jax.nn.sigmoid(gates[:, 0 * Hc:1 * Hc])
    f_g = jax.nn.sigmoid(gates[:, 1 * Hc:2 * Hc])
    g_g = jnp.tanh(gates[:, 2 * Hc:3 * Hc])
    o_g = jax.nn.sigmoid(gates[:, 3 * Hc:4 * Hc])

    c_new = f_g * c + i_g * g_g
    h_new = o_g * jnp.tanh(c_new)

    out = (jnp.dot(h_new.astype(w_lin_ref.dtype), w_lin_ref[...],
                   preferred_element_type=jnp.float32)
           + b_lin_ref[...])                                  # (Np, Ep), f32

    out_ref[...] = out.astype(out_ref.dtype)
    x_s[...] = out                       # feed output back as next step's input
    h_ref[...] = h_new                   # carried in VMEM across grid steps
    c_ref[...] = c_new


def prepare_params(params, dtype=jnp.bfloat16):
    """One-time parameter preparation (call once, NOT per decode step).

    Pre-transposes W_ih/W_hh/linear.weight, sums the two biases, and pads
    everything to (8,128)-tiled, per-gate 128-lane-aligned layouts.  Weights
    default to bf16 storage (halves HBM->VMEM DMA and VMEM footprint on
    v5e/v6e/v7x); f32 accumulation is preserved in-kernel.  Pass
    dtype=jnp.float32 for a bit-tighter match to an f32 reference.
    """
    w_ih = jnp.asarray(params["w_ih"], jnp.float32)    # (4H, E)
    w_hh = jnp.asarray(params["w_hh"], jnp.float32)    # (4H, H)
    b_sum = (jnp.asarray(params["b_ih"], jnp.float32)
             + jnp.asarray(params["b_hh"], jnp.float32))      # (4H,)
    w_lin = jnp.asarray(params["w_lin"], jnp.float32)  # (E, H)
    b_lin = jnp.asarray(params["b_lin"], jnp.float32)  # (E,)

    H4, E = w_ih.shape
    H = H4 // 4
    Ep = _round_up(E, LANE)
    Hc = _round_up(H, LANE)
    G = 4 * Hc

    w_ih_t = jnp.zeros((Ep, G), jnp.float32)
    w_hh_t = jnp.zeros((Hc, G), jnp.float32)
    b_gate = jnp.zeros((1, G), jnp.float32)
    for g in range(4):   # place each PyTorch gate [i,f,g,o] in its own 128-lane block
        w_ih_t = w_ih_t.at[:E, g * Hc:g * Hc + H].set(w_ih[g * H:(g + 1) * H, :].T)
        w_hh_t = w_hh_t.at[:H, g * Hc:g * Hc + H].set(w_hh[g * H:(g + 1) * H, :].T)
        b_gate = b_gate.at[0, g * Hc:g * Hc + H].set(b_sum[g * H:(g + 1) * H])

    w_lin_t = jnp.zeros((Hc, Ep), jnp.float32).at[:H, :E].set(w_lin.T)
    b_lin_p = jnp.zeros((1, Ep), jnp.float32).at[0, :E].set(b_lin)

    return {
        "w_ih": w_ih_t.astype(dtype),
        "w_hh": w_hh_t.astype(dtype),
        "b_gate": b_gate,              # biases stay f32 (VPU add on f32 accumulator)
        "w_lin": w_lin_t.astype(dtype),
        "b_lin": b_lin_p,
        "E": E, "H": H, "Ep": Ep, "Hc": Hc,
    }


def decoder_decode(x, hidden, cell, prep, num_steps):
    """Run `num_steps` autoregressive decoder steps in ONE pallas_call.

    x: (1, N, E) initial input; hidden, cell: (1, N, H).
    Returns (outs (num_steps, N, E), hidden (1,N,H), cell (1,N,H)); step t's
    output is fed back as step t+1's input (standard LSTM-AE decoding).
    With num_steps=1 this is exactly the PyTorch module's forward().
    """
    assert x.shape[0] == 1 and hidden.shape[0] == 1 and cell.shape[0] == 1
    x2, h2, c2 = x[0], hidden[0], cell[0]
    N = x2.shape[0]
    E, H, Ep, Hc = prep["E"], prep["H"], prep["Ep"], prep["Hc"]
    G = 4 * Hc
    Np = max(_round_up(N, SUBLANE), SUBLANE)
    T = int(num_steps)

    # Pad ONCE per decoded sequence (not per step).  Zero padding is inert:
    # zero weight/bias lanes keep padded state lanes exactly zero every step.
    xp = jnp.zeros((Np, Ep), jnp.float32).at[:N, :E].set(x2.astype(jnp.float32))
    hp = jnp.zeros((Np, Hc), jnp.float32).at[:N, :H].set(h2.astype(jnp.float32))
    cp = jnp.zeros((Np, Hc), jnp.float32).at[:N, :H].set(c2.astype(jnp.float32))

    # VMEM budget (weights held resident; x2 headroom for double buffering).
    wbytes = (prep["w_ih"].size * prep["w_ih"].dtype.itemsize
              + prep["w_hh"].size * prep["w_hh"].dtype.itemsize
              + prep["w_lin"].size * prep["w_lin"].dtype.itemsize)
    iobytes = 4 * (3 * Np * Hc + 2 * Np * Ep + G + Ep)
    est = 2 * (wbytes + iobytes)
    if est > 48 * 2 ** 20:
        # TODO(synk): tile the 4*Hc gate-column axis with a second grid axis
        # (blocked w_ih/w_hh specs) once H is too large for resident-VMEM weights.
        raise NotImplementedError("gate weights too large for resident-VMEM path")
    vmem_limit = int(min(max(2 * est, 16 * 2 ** 20), 64 * 2 ** 20))

    const = lambda t: (0, 0)
    grid_spec = pltpu.PrefetchScalarGridSpec(
        num_scalar_prefetch=0,
        grid=(T,),
        in_specs=[
            pl.BlockSpec((Np, Ep), const),        # x0          (fetched once)
            pl.BlockSpec((Np, Hc), const),        # hidden0     (fetched once)
            pl.BlockSpec((Np, Hc), const),        # cell0       (fetched once)
            pl.BlockSpec((Ep, G), const),         # W_ih^T      (VMEM resident)
            pl.BlockSpec((Hc, G), const),         # W_hh^T      (VMEM resident)
            pl.BlockSpec((1, G), const),          # b_ih+b_hh   (VMEM resident)
            pl.BlockSpec((Hc, Ep), const),        # linear.W^T  (VMEM resident)
            pl.BlockSpec((1, Ep), const),         # linear.b    (VMEM resident)
        ],
        out_specs=(
            pl.BlockSpec((None, Np, Ep), lambda t: (t, 0, 0)),  # out per step
            pl.BlockSpec((Np, Hc), const),        # final hidden (state carry)
            pl.BlockSpec((Np, Hc), const),        # final cell   (state carry)
        ),
        scratch_shapes=[pltpu.VMEM((Np, Ep), jnp.float32)],     # x carry
    )

    outs_p, h_p, c_p = pl.pallas_call(
        decode_kernel,
        grid_spec=grid_spec,
        out_shape=(
            jax.ShapeDtypeStruct((T, Np, Ep), jnp.float32),
            jax.ShapeDtypeStruct((Np, Hc), jnp.float32),
            jax.ShapeDtypeStruct((Np, Hc), jnp.float32),
        ),
        # In-place state update: hidden -> h_out, cell -> c_out.
        input_output_aliases={1: 1, 2: 2},
        compiler_params=pltpu.CompilerParams(
            dimension_semantics=("arbitrary",),   # recurrence: steps are sequential
            vmem_limit_bytes=vmem_limit,
        ),
    )(xp, hp, cp, prep["w_ih"], prep["w_hh"], prep["b_gate"],
      prep["w_lin"], prep["b_lin"])

    outs = outs_p[:, :N, :E]
    h_new = h_p[:N, :H][None, ...]
    c_new = c_p[:N, :H][None, ...]
    return outs, h_new, c_new


def decoder_forward(x, hidden, cell, prep):
    """Exact semantics of the PyTorch Decoder.forward (single step)."""
    outs, h_new, c_new = decoder_decode(x, hidden, cell, prep, num_steps=1)
    return outs[0], h_new, c_new


def init_params(key, input_size, hidden_size):
    """Deterministic synthetic params matching nn.LSTM(E,H,1) + nn.Linear(H,E)."""
    k = 1.0 / jnp.sqrt(hidden_size)
    keys = jax.random.split(key, 6)
    return {
        "w_ih": jax.random.uniform(keys[0], (4 * hidden_size, input_size),
                                   jnp.float32, -k, k),
        "w_hh": jax.random.uniform(keys[1], (4 * hidden_size, hidden_size),
                                   jnp.float32, -k, k),
        "b_ih": jax.random.uniform(keys[2], (4 * hidden_size,),
                                   jnp.float32, -k, k),
        "b_hh": jax.random.uniform(keys[3], (4 * hidden_size,),
                                   jnp.float32, -k, k),
        "w_lin": jax.random.uniform(keys[4], (input_size, hidden_size),
                                    jnp.float32, -k, k),
        "b_lin": jax.random.uniform(keys[5], (input_size,),
                                    jnp.float32, -k, k),
    }


def decoder_reference(x, hidden, cell, params):
    """Pure-JAX reference of the PyTorch forward (single step)."""
    x2, h2, c2 = x[0], hidden[0], cell[0]
    H = h2.shape[-1]
    gates = (x2 @ params["w_ih"].T + params["b_ih"]
             + h2 @ params["w_hh"].T + params["b_hh"])
    i_g = jax.nn.sigmoid(gates[:, 0 * H:1 * H])
    f_g = jax.nn.sigmoid(gates[:, 1 * H:2 * H])
    g_g = jnp.tanh(gates[:, 2 * H:3 * H])
    o_g = jax.nn.sigmoid(gates[:, 3 * H:4 * H])
    c_new = f_g * c2 + i_g * g_g
    h_new = o_g * jnp.tanh(c_new)
    out = h_new @ params["w_lin"].T + params["b_lin"]
    return out, h_new[None, ...], c_new[None, ...]


def decode_reference(x, hidden, cell, params, num_steps):
    """Pure-JAX reference for the autoregressive multi-step decode."""
    outs = []
    xt, h, c = x, hidden, cell
    for _ in range(num_steps):
        out, h, c = decoder_reference(xt, h, c, params)
        outs.append(out)
        xt = out[None, ...]
    return jnp.stack(outs, axis=0), h, c


if __name__ == "__main__":
    N, E, H = 4, 8, 16   # batch, input_size, hidden_size
    T = 8                # decode steps fused into one kernel launch

    key = jax.random.PRNGKey(0)
    k_x, k_h, k_c, k_p = jax.random.split(key, 4)

    x = jax.random.normal(k_x, (1, N, E), jnp.float32)
    hidden = jax.random.normal(k_h, (1, N, H), jnp.float32)
    cell = jax.random.normal(k_c, (1, N, H), jnp.float32)
    params = init_params(k_p, E, H)

    # ---- f32 weights: tight correctness checks ------------------------------
    prep32 = prepare_params(params, dtype=jnp.float32)

    # Single step == PyTorch module forward.
    out, h1, c1 = decoder_forward(x, hidden, cell, prep32)
    jax.block_until_ready((out, h1, c1))
    ref_out, ref_h, ref_c = decoder_reference(x, hidden, cell, params)
    assert out.shape == (N, E) and h1.shape == (1, N, H) and c1.shape == (1, N, H)
    assert jnp.allclose(out, ref_out, atol=1e-4)
    assert jnp.allclose(h1, ref_h, atol=1e-4)
    assert jnp.allclose(c1, ref_c, atol=1e-4)

    # T autoregressive steps in ONE pallas_call (weights stay VMEM-resident).
    outs, hT, cT = decoder_decode(x, hidden, cell, prep32, num_steps=T)
    jax.block_until_ready((outs, hT, cT))
    ref_outs, ref_hT, ref_cT = decode_reference(x, hidden, cell, params, T)
    assert outs.shape == (T, N, E)
    assert jnp.allclose(outs, ref_outs, atol=2e-3)
    assert jnp.allclose(hT, ref_hT, atol=2e-3)
    assert jnp.allclose(cT, ref_cT, atol=2e-3)

    # ---- bf16 weights (default; bandwidth-optimal): loose functional check ---
    prep_bf16 = prepare_params(params)              # dtype=jnp.bfloat16 default
    outs_b, hT_b, cT_b = decoder_decode(x, hidden, cell, prep_bf16, num_steps=T)
    jax.block_until_ready((outs_b, hT_b, cT_b))
    assert jnp.all(jnp.isfinite(outs_b))
    assert jnp.allclose(outs_b, ref_outs, atol=1e-1)   # expected bf16 weight error ~1e-2

    print("KERNEL_OK")
</pallas_src>

<mosaic_0001>
module attributes {stable_mosaic.version = 11 : i64} {
  func.func @decode_kernel(%arg0: i32, %arg1: memref<8x128xf32, #tpu.memory_space<vmem>>, %arg2: memref<8x128xf32, #tpu.memory_space<vmem>>, %arg3: memref<8x128xf32, #tpu.memory_space<vmem>>, %arg4: memref<128x512xf32, #tpu.memory_space<vmem>>, %arg5: memref<128x512xf32, #tpu.memory_space<vmem>>, %arg6: memref<1x512xf32, #tpu.memory_space<vmem>>, %arg7: memref<128x128xf32, #tpu.memory_space<vmem>>, %arg8: memref<1x128xf32, #tpu.memory_space<vmem>>, %arg9: memref<1x8x128xf32, #tpu.memory_space<vmem>>, %arg10: memref<8x128xf32, #tpu.memory_space<vmem>>, %arg11: memref<8x128xf32, #tpu.memory_space<vmem>>, %arg12: memref<8x128xf32, #tpu.memory_space<vmem>>) attributes {dimension_semantics = [#tpu.dimension_semantics<arbitrary>], iteration_bounds = array<i64: 1>, scalar_prefetch = 0 : i64, scratch_operands = 1 : i64, tpu.core_type = #tpu.core_type<tc>, window_params = [{pipeline_mode = #tpu.pipeline_mode<synchronous>, transform_indices = @transform_0, window_bounds = array<i64: 8, 128>}, {pipeline_mode = #tpu.pipeline_mode<synchronous>, transform_indices = @transform_1, window_bounds = array<i64: 8, 128>}, {pipeline_mode = #tpu.pipeline_mode<synchronous>, transform_indices = @transform_2, window_bounds = array<i64: 8, 128>}, {pipeline_mode = #tpu.pipeline_mode<synchronous>, transform_indices = @transform_3, window_bounds = array<i64: 128, 512>}, {pipeline_mode = #tpu.pipeline_mode<synchronous>, transform_indices = @transform_4, window_bounds = array<i64: 128, 512>}, {pipeline_mode = #tpu.pipeline_mode<synchronous>, transform_indices = @transform_5, window_bounds = array<i64: 1, 512>}, {pipeline_mode = #tpu.pipeline_mode<synchronous>, transform_indices = @transform_6, window_bounds = array<i64: 128, 128>}, {pipeline_mode = #tpu.pipeline_mode<synchronous>, transform_indices = @transform_7, window_bounds = array<i64: 1, 128>}, {transform_indices = @transform_8, window_bounds = array<i64: 1, 8, 128>}, {pipeline_mode = #tpu.pipeline_mode<synchronous>, transform_indices = @transform_9, window_bounds = array<i64: 8, 128>}, {pipeline_mode = #tpu.pipeline_mode<synchronous>, transform_indices = @transform_10, window_bounds = array<i64: 8, 128>}]} {
    %c0_i32 = arith.constant 0 : i32
    %0 = arith.cmpi eq, %arg0, %c0_i32 : i32
    %1 = arith.extui %0 : i1 to i32
    %c0_i32_0 = arith.constant 0 : i32
    %2 = arith.cmpi ne, %1, %c0_i32_0 : i32
    scf.if %2 {
      %c0_30 = arith.constant 0 : index
      %c0_31 = arith.constant 0 : index
      %50 = vector.load %arg1[%c0_30, %c0_31] : memref<8x128xf32, #tpu.memory_space<vmem>>, vector<8x128xf32>
      %c0_32 = arith.constant 0 : index
      %c0_33 = arith.constant 0 : index
      %51 = vector.load %arg12[%c0_32, %c0_33] : memref<8x128xf32, #tpu.memory_space<vmem>>, vector<8x128xf32>
      tpu.vector_store %arg12[%c0_32, %c0_33], %50 {strides = array<i32>} : memref<8x128xf32, #tpu.memory_space<vmem>>, vector<8x128xf32>,
      %c0_34 = arith.constant 0 : index
      %c0_35 = arith.constant 0 : index
      %52 = vector.load %arg2[%c0_34, %c0_35] : memref<8x128xf32, #tpu.memory_space<vmem>>, vector<8x128xf32>
      %c0_36 = arith.constant 0 : index
      %c0_37 = arith.constant 0 : index
      %53 = vector.load %arg10[%c0_36, %c0_37] : memref<8x128xf32, #tpu.memory_space<vmem>>, vector<8x128xf32>
      tpu.vector_store %arg10[%c0_36, %c0_37], %52 {strides = array<i32>} : memref<8x128xf32, #tpu.memory_space<vmem>>, vector<8x128xf32>,
      %c0_38 = arith.constant 0 : index
      %c0_39 = arith.constant 0 : index
      %54 = vector.load %arg3[%c0_38, %c0_39] : memref<8x128xf32, #tpu.memory_space<vmem>>, vector<8x128xf32>
      %c0_40 = arith.constant 0 : index
      %c0_41 = arith.constant 0 : index
      %55 = vector.load %arg11[%c0_40, %c0_41] : memref<8x128xf32, #tpu.memory_space<vmem>>, vector<8x128xf32>
      tpu.vector_store %arg11[%c0_40, %c0_41], %54 {strides = array<i32>} : memref<8x128xf32, #tpu.memory_space<vmem>>, vector<8x128xf32>,
    } else {
    }
    %c0 = arith.constant 0 : index
    %c0_1 = arith.constant 0 : index
    %3 = vector.load %arg12[%c0, %c0_1] : memref<8x128xf32, #tpu.memory_space<vmem>>, vector<8x128xf32>
    %c0_2 = arith.constant 0 : index
    %c0_3 = arith.constant 0 : index
    %4 = vector.load %arg10[%c0_2, %c0_3] : memref<8x128xf32, #tpu.memory_space<vmem>>, vector<8x128xf32>
    %c0_4 = arith.constant 0 : index
    %c0_5 = arith.constant 0 : index
    %5 = vector.load %arg11[%c0_4, %c0_5] : memref<8x128xf32, #tpu.memory_space<vmem>>, vector<8x128xf32>
    %c0_6 = arith.constant 0 : index
    %c0_7 = arith.constant 0 : index
    %6 = vector.load %arg4[%c0_6, %c0_7] : memref<128x512xf32, #tpu.memory_space<vmem>>, vector<128x512xf32>
    %cst = arith.constant dense<0.000000e+00> : vector<8x512xf32>
    %7 = tpu.matmul %3, %6, %cst {dimension_numbers = #tpu.dot_dimension_numbers<[1], [0], [0], [1], [0, 0, 1, 1], [], []>} : vector<8x128xf32>, vector<128x512xf32>, vector<8x512xf32> -> vector<8x512xf32>
    %c0_8 = arith.constant 0 : index
    %c0_9 = arith.constant 0 : index
    %8 = vector.load %arg5[%c0_8, %c0_9] : memref<128x512xf32, #tpu.memory_space<vmem>>, vector<128x512xf32>
    %cst_10 = arith.constant dense<0.000000e+00> : vector<8x512xf32>
    %9 = tpu.matmul %4, %8, %cst_10 {dimension_numbers = #tpu.dot_dimension_numbers<[1], [0], [0], [1], [0, 0, 1, 1], [], []>} : vector<8x128xf32>, vector<128x512xf32>, vector<8x512xf32> -> vector<8x512xf32>
    %10 = arith.addf %7, %9 : vector<8x512xf32>
    %c0_11 = arith.constant 0 : index
    %c0_12 = arith.constant 0 : index
    %11 = vector.load %arg6[%c0_11, %c0_12] : memref<1x512xf32, #tpu.memory_space<vmem>>, vector<1x512xf32>
    %12 = vector.broadcast %11 : vector<1x512xf32> to vector<8x512xf32>
    %13 = arith.addf %10, %12 : vector<8x512xf32>
    %14 = vector.extract_strided_slice %13 {offsets = [0, 0], sizes = [8, 128], strides = [1, 1]} : vector<8x512xf32> to vector<8x128xf32>
    %15 = arith.negf %14 : vector<8x128xf32>
    %16 = math.exp %15 : vector<8x128xf32>
    %cst_13 = arith.constant 1.000000e+00 : f32
    %17 = vector.broadcast %cst_13 : f32 to vector<8x128xf32>
    %18 = arith.addf %17, %16 : vector<8x128xf32>
    %19 = arith.divf %17, %18 : vector<8x128xf32>
    %20 = vector.extract_strided_slice %13 {offsets = [0, 128], sizes = [8, 128], strides = [1, 1]} : vector<8x512xf32> to vector<8x128xf32>
    %21 = arith.negf %20 : vector<8x128xf32>
    %22 = math.exp %21 : vector<8x128xf32>
    %cst_14 = arith.constant 1.000000e+00 : f32
    %23 = vector.broadcast %cst_14 : f32 to vector<8x128xf32>
    %24 = arith.addf %23, %22 : vector<8x128xf32>
    %25 = arith.divf %23, %24 : vector<8x128xf32>
    %26 = vector.extract_strided_slice %13 {offsets = [0, 256], sizes = [8, 128], strides = [1, 1]} : vector<8x512xf32> to vector<8x128xf32>
    %27 = math.tanh %26 : vector<8x128xf32>
    %28 = vector.extract_strided_slice %13 {offsets = [0, 384], sizes = [8, 128], strides = [1, 1]} : vector<8x512xf32> to vector<8x128xf32>
    %29 = arith.negf %28 : vector<8x128xf32>
    %30 = math.exp %29 : vector<8x128xf32>
    %cst_15 = arith.constant 1.000000e+00 : f32
    %31 = vector.broadcast %cst_15 : f32 to vector<8x128xf32>
    %32 = arith.addf %31, %30 : vector<8x128xf32>
    %33 = arith.divf %31, %32 : vector<8x128xf32>
    %34 = arith.mulf %25, %5 : vector<8x128xf32>
    %35 = arith.mulf %19, %27 : vector<8x128xf32>
    %36 = arith.addf %34, %35 : vector<8x128xf32>
    %37 = math.tanh %36 : vector<8x128xf32>
    %38 = arith.mulf %33, %37 : vector<8x128xf32>
    %c0_16 = arith.constant 0 : index
    %c0_17 = arith.constant 0 : index
    %39 = vector.load %arg7[%c0_16, %c0_17] : memref<128x128xf32, #tpu.memory_space<vmem>>, vector<128x128xf32>
    %cst_18 = arith.constant dense<0.000000e+00> : vector<8x128xf32>
    %40 = tpu.matmul %38, %39, %cst_18 {dimension_numbers = #tpu.dot_dimension_numbers<[1], [0], [0], [1], [0, 0, 1, 1], [], []>} : vector<8x128xf32>, vector<128x128xf32>, vector<8x128xf32> -> vector<8x128xf32>
    %c0_19 = arith.constant 0 : index
    %c0_20 = arith.constant 0 : index
    %41 = vector.load %arg8[%c0_19, %c0_20] : memref<1x128xf32, #tpu.memory_space<vmem>>, vector<1x128xf32>
    %42 = vector.broadcast %41 : vector<1x128xf32> to vector<8x128xf32>
    %43 = arith.addf %40, %42 : vector<8x128xf32>
    %c0_21 = arith.constant 0 : index
    %c0_22 = arith.constant 0 : index
    %c0_23 = arith.constant 0 : index
    %44 = vector.load %arg9[%c0_21, %c0_22, %c0_23] : memref<1x8x128xf32, #tpu.memory_space<vmem>>, vector<1x8x128xf32>
    %45 = vector.shape_cast %44 : vector<1x8x128xf32> to vector<8x128xf32>
    %46 = vector.shape_cast %43 : vector<8x128xf32> to vector<1x8x128xf32>
    tpu.vector_store %arg9[%c0_21, %c0_22, %c0_23], %46 {strides = array<i32>} : memref<1x8x128xf32, #tpu.memory_space<vmem>>, vector<1x8x128xf32>,
    %c0_24 = arith.constant 0 : index
    %c0_25 = arith.constant 0 : index
    %47 = vector.load %arg12[%c0_24, %c0_25] : memref<8x128xf32, #tpu.memory_space<vmem>>, vector<8x128xf32>
    tpu.vector_store %arg12[%c0_24, %c0_25], %43 {strides = array<i32>} : memref<8x128xf32, #tpu.memory_space<vmem>>, vector<8x128xf32>,
    %c0_26 = arith.constant 0 : index
    %c0_27 = arith.constant 0 : index
    %48 = vector.load %arg10[%c0_26, %c0_27] : memref<8x128xf32, #tpu.memory_space<vmem>>, vector<8x128xf32>
    tpu.vector_store %arg10[%c0_26, %c0_27], %38 {strides = array<i32>} : memref<8x128xf32, #tpu.memory_space<vmem>>, vector<8x128xf32>,
    %c0_28 = arith.constant 0 : index
    %c0_29 = arith.constant 0 : index
    %49 = vector.load %arg11[%c0_28, %c0_29] : memref<8x128xf32, #tpu.memory_space<vmem>>, vector<8x128xf32>
    tpu.vector_store %arg11[%c0_28, %c0_29], %36 {strides = array<i32>} : memref<8x128xf32, #tpu.memory_space<vmem>>, vector<8x128xf32>,
    return
  }
  func.func @transform_0(%arg0: i32) -> (i32, i32) {
    %c0_i32 = arith.constant 0 : i32
    %c0_i32_0 = arith.constant 0 : i32
    %c0_i32_1 = arith.constant 0 : i32
    return %c0_i32, %c0_i32_0 : i32, i32
  }
  func.func @transform_1(%arg0: i32) -> (i32, i32) {
    %c0_i32 = arith.constant 0 : i32
    %c0_i32_0 = arith.constant 0 : i32
    %c0_i32_1 = arith.constant 0 : i32
    return %c0_i32, %c0_i32_0 : i32, i32
  }
  func.func @transform_2(%arg0: i32) -> (i32, i32) {
    %c0_i32 = arith.constant 0 : i32
    %c0_i32_0 = arith.constant 0 : i32
    %c0_i32_1 = arith.constant 0 : i32
    return %c0_i32, %c0_i32_0 : i32, i32
  }
  func.func @transform_3(%arg0: i32) -> (i32, i32) {
    %c0_i32 = arith.constant 0 : i32
    %c0_i32_0 = arith.constant 0 : i32
    %c0_i32_1 = arith.constant 0 : i32
    return %c0_i32, %c0_i32_0 : i32, i32
  }
  func.func @transform_4(%arg0: i32) -> (i32, i32) {
    %c0_i32 = arith.constant 0 : i32
    %c0_i32_0 = arith.constant 0 : i32
    %c0_i32_1 = arith.constant 0 : i32
    return %c0_i32, %c0_i32_0 : i32, i32
  }
  func.func @transform_5(%arg0: i32) -> (i32, i32) {
    %c0_i32 = arith.constant 0 : i32
    %c0_i32_0 = arith.constant 0 : i32
    %c0_i32_1 = arith.constant 0 : i32
    return %c0_i32, %c0_i32_0 : i32, i32
  }
  func.func @transform_6(%arg0: i32) -> (i32, i32) {
    %c0_i32 = arith.constant 0 : i32
    %c0_i32_0 = arith.constant 0 : i32
    %c0_i32_1 = arith.constant 0 : i32
    return %c0_i32, %c0_i32_0 : i32, i32
  }
  func.func @transform_7(%arg0: i32) -> (i32, i32) {
    %c0_i32 = arith.constant 0 : i32
    %c0_i32_0 = arith.constant 0 : i32
    %c0_i32_1 = arith.constant 0 : i32
    return %c0_i32, %c0_i32_0 : i32, i32
  }
  func.func @transform_8(%arg0: i32) -> (i32, i32, i32) {
    %c0_i32 = arith.constant 0 : i32
    %c0_i32_0 = arith.constant 0 : i32
    %c0_i32_1 = arith.constant 0 : i32
    return %arg0, %c0_i32, %c0_i32_0 : i32, i32, i32
  }
  func.func @transform_9(%arg0: i32) -> (i32, i32) {
    %c0_i32 = arith.constant 0 : i32
    %c0_i32_0 = arith.constant 0 : i32
    %c0_i32_1 = arith.constant 0 : i32
    return %c0_i32, %c0_i32_0 : i32, i32
  }
  func.func @transform_10(%arg0: i32) -> (i32, i32) {
    %c0_i32 = arith.constant 0 : i32
    %c0_i32_0 = arith.constant 0 : i32
    %c0_i32_1 = arith.constant 0 : i32
    return %c0_i32, %c0_i32_0 : i32, i32
  }
}

</mosaic_0001>

<bundles_post_ra>
// kernel: tpu_custom_call.1
= control target key start
LH: loop header
LB: loop body
LE: loop exit
PB: predicated region body
PF: predicated region fallthrough
CT: control target
= control target key end

     0   :  { %16 = vsyncpa [#allocation4], 0  ;;  %s1093_s0 = inlined_call_operand.vmem [shape: f32[8,128], index: 0, kind: input, shape index: {}]   ;;  %s1094_s1 = inlined_call_operand.hbm [shape: f32[8,128], index: 1, kind: input, shape index: {}, may-alias: {1,9}]   ;;  %s1095_s2 = inlined_call_operand.hbm [shape: f32[8,128], index: 2, kind: input, shape index: {}, may-alias: {2,10}]   ;;  %s1096_s3 = inlined_call_operand.hbm [shape: f32[128,512], index: 3, kind: input, shape index: {}]   ;;  %s1097_s4 = inlined_call_operand.hbm [shape: f32[128,512], index: 4, kind: input, shape index: {}]   ;;  %s1098_s5 = inlined_call_operand.vmem [shape: f32[1,512], index: 5, kind: input, shape index: {}]   ;;  %s1099_s6 = inlined_call_operand.hbm [shape: f32[128,128], index: 6, kind: input, shape index: {}]   ;;  %s1100_s7 = inlined_call_operand.vmem [shape: f32[1,128], index: 7, kind: input, shape index: {}]   ;;  %s1101_s8 = inlined_call_operand.hbm [shape: f32[1,8,128], index: 8, kind: output, shape index: {0}]   ;;  %s1102_s9 = inlined_call_operand.hbm [shape: f32[8,128], index: 9, kind: output, shape index: {1}, may-alias: {1,9}]   ;;  %s1103_s10 = inlined_call_operand.hbm [shape: f32[8,128], index: 10, kind: output, shape index: {2}, may-alias: {2,10}]  }
   0x1   :  { %17 = vsyncpa [#allocation7], 0 }
   0x2   :  { %18 = vsyncpa [#allocation10], 0 }
   0x3   :  { %19 = vsyncpa [#allocation5], 0 }
   0x4   :  { %20 = vsyncpa [#allocation14], 0  ;;  %s970_s13 = smov [#allocation6]  }
   0x5   :  { %s39_s14 = sshll.u32 %s970_s13, 4  ;;  %s40_s14 = int_to_ptr.vmem [resolvable:$true] %s39_s14 }
   0x6   :  { %s808_s15 = scalar_lea.vmem %s40_s14, 128  ;;  %p813_p1 = scmp.lt.s32.totalorder %s40_s14, %s40_s14 }
   0x7   :  { %p809_p0 = scmp.ne.s32.totalorder %s40_s14, %s808_s15  ;;  %p814_p2 = scmp.lt.s32.totalorder %s808_s15, %s808_s15 }
   0x9   :  { %p815_p3 = por %p814_p2, %p813_p1 }
   0xb   :  { %p816_p4 = pnand %p815_p3, %p809_p0 }
   0xd   :  { %819 = shalt.err (!%p816_p4)
}
   0xe   :  { %42 = dma.hbm_to_vmem [thread:$0]  %s1095_s2, 128, %s40_s14, [#allocation7]  }
   0xf   :  { %s971_s18 = smov [#allocation9]   ;;  %s972_s20 = smov [#allocation3]  }
  0x10   :  { %s60_s19 = sshll.u32 %s971_s18, 4  ;;  %s29_s21 = sshll.u32 %s972_s20, 4  ;;  %s61_s19 = int_to_ptr.vmem [resolvable:$true] %s60_s19  ;;  %s30_s21 = int_to_ptr.vmem [resolvable:$true] %s29_s21 }
  0x11   :  { %s828_s22 = scalar_lea.vmem %s61_s19, 8192  ;;  %p833_p6 = scmp.lt.s32.totalorder %s61_s19, %s61_s19 }
  0x12   :  { %p829_p5 = scmp.ne.s32.totalorder %s61_s19, %s828_s22  ;;  %p834_p7 = scmp.lt.s32.totalorder %s828_s22, %s828_s22 }
  0x14   :  { %p835_p8 = por %p834_p7, %p833_p6 }
  0x16   :  { %p836_p9 = pnand %p835_p8, %p829_p5 }
  0x18   :  { %839 = shalt.err (!%p836_p9)
}
  0x19   :  { %s973_s23 = smov 512   ;;  %s974_s24 = smov 32  }
  0x1a   :  { %66 = dma.hbm_to_vmem [thread:$0]  %s1097_s4, 8192, %s61_s19, [#allocation10], %s973_s23, %s973_s23, %s974_s24  }
  0x1b   :  { %s848_s2 = scalar_lea.vmem %s30_s21, 128  ;;  %p853_p11 = scmp.lt.s32.totalorder %s30_s21, %s30_s21 }
  0x1c   :  { %p849_p10 = scmp.ne.s32.totalorder %s30_s21, %s848_s2  ;;  %p854_p12 = scmp.lt.s32.totalorder %s848_s2, %s848_s2 }
  0x1e   :  { %p855_p13 = por %p854_p12, %p853_p11 }
  0x20   :  { %p856_p0 = pnand %p855_p13, %p849_p10 }
  0x22   :  { %859 = shalt.err (!%p856_p0)
}
  0x23   :  { %32 = dma.hbm_to_vmem [thread:$0]  %s1094_s1, 128, %s30_s21, [#allocation4]  }
  0x24   :  { %s975_s29 = smov [#allocation8]   ;;  %s976_s11 = smov [#allocation11]  }
  0x25   :  { %s48_s30 = sshll.u32 %s975_s29, 4  ;;  %s74_s12 = sshll.u32 %s976_s11, 4  ;;  %s49_s30 = int_to_ptr.vmem [resolvable:$true] %s48_s30  ;;  %s75_s12 = int_to_ptr.vmem [resolvable:$true] %s74_s12 }
  0x26   :  { %s868_s13 = scalar_lea.vmem %s49_s30, 8192  ;;  %p873_p2 = scmp.lt.s32.totalorder %s49_s30, %s49_s30 }
  0x27   :  { %p869_p1 = scmp.ne.s32.totalorder %s49_s30, %s868_s13  ;;  %p874_p3 = scmp.lt.s32.totalorder %s868_s13, %s868_s13 }
  0x29   :  { %p875_p4 = por %p874_p3, %p873_p2 }
  0x2b   :  { %p876_p5 = pnand %p875_p4, %p869_p1 }
  0x2d   :  { %879 = shalt.err (!%p876_p5)
}
  0x2e   :  { %54 = dma.hbm_to_vmem [thread:$0]  %s1096_s3, 8192, %s49_s30, [#allocation7], %s973_s23, %s973_s23, %s974_s24  }
  0x2f   :  { %s888_s15 = scalar_lea.vmem %s75_s12, 2048  ;;  %p893_p7 = scmp.lt.s32.totalorder %s75_s12, %s75_s12 }
  0x30   :  { %p889_p6 = scmp.ne.s32.totalorder %s75_s12, %s888_s15  ;;  %p894_p8 = scmp.lt.s32.totalorder %s888_s15, %s888_s15 }
  0x32   :  { %p895_p9 = por %p894_p8, %p893_p7 }
  0x34   :  { %p896_p10 = pnand %p895_p9, %p889_p6 }
  0x36   :  { %899 = shalt.err (!%p896_p10)
}
  0x37   :  { %s977_s1 = smov 128   ;;  %s978_s16 = smov 8  }
  0x38   :  { %80 = dma.hbm_to_vmem [thread:$0]  %s1099_s6, 2048, %s75_s12, [#allocation10], %s977_s1, %s977_s1, %s978_s16  }
  0x39   :  { %960 = dma.done.wait [#allocation4], 128  }
  0x3a   :  { %961 = vsyncadd [#allocation4], 4294967168 }
  0x3b   :  { %962 = dma.done.wait [#allocation7], 8320  }
  0x3c   :  { %963 = vsyncadd [#allocation7], 4294958976 }
  0x3d   :  { %964 = dma.done.wait [#allocation10], 10240  }
  0x3e   :  { %965 = vsyncadd [#allocation10], 4294957056  ;;  %v979_v0 = vmov 0.0   ;;  %v236_v1 = vld [vmem:[#allocation9 + $0x1e8] sm:$0xff]  ;;  %v238_v2 = vld [vmem:[#allocation9 + $0x1f8] sm:$0xff]  ;;  %vm980_vm0 = vmmov 0  }
  0x3f   :  { %303 = vmatprep.mubr.f32.mxu0 %v979_v0  ;;  %374 = vmatprep.mubr.f32.mxu1 %v979_v0  ;;  %v235_v3 = vld [vmem:[#allocation9 + $0x1e0] sm:$0xff]  ;;  %v237_v4 = vld [vmem:[#allocation9 + $0x1f0] sm:$0xff]  ;;  %v232_v5 = vld [vmem:[#allocation9 + $0x1c8] sm:$0xff] }
  0x40   :  { %239 = vmatprep.subr.mxu0 %v236_v1  ;;  %310 = vmatprep.subr.mxu1 %v238_v2  ;;  %v234_v6 = vld [vmem:[#allocation9 + $0x1d8] sm:$0xff]  ;;  %v231_v7 = vld [vmem:[#allocation9 + $0x1c0] sm:$0xff]  ;;  %v233_v8 = vld [vmem:[#allocation9 + $0x1d0] sm:$0xff] }
  0x41   :  { %240 = vmatpush1.msra.mxu0 %v235_v3  ;;  %311 = vmatpush1.msra.mxu1 %v237_v4  ;;  %v228_v9 = vld [vmem:[#allocation9 + $0x1a8] sm:$0xff]  ;;  %v230_v10 = vld [vmem:[#allocation9 + $0x1b8] sm:$0xff]  ;;  %v227_v11 = vld [vmem:[#allocation9 + $0x1a0] sm:$0xff] }
  0x42   :  { %241 = vmatprep.subr.mxu0 %v232_v5  ;;  %312 = vmatprep.subr.mxu1 %v234_v6  ;;  %v229_v12 = vld [vmem:[#allocation9 + $0x1b0] sm:$0xff]  ;;  %v224_v13 = vld [vmem:[#allocation9 + $0x188] sm:$0xff]  ;;  %v226_v14 = vld [vmem:[#allocation9 + $0x198] sm:$0xff] }
  0x43   :  { %242 = vmatpush1.msra.mxu0 %v231_v7  ;;  %313 = vmatpush1.msra.mxu1 %v233_v8  ;;  %v223_v15 = vld [vmem:[#allocation9 + $0x180] sm:$0xff]  ;;  %v225_v16 = vld [vmem:[#allocation9 + $0x190] sm:$0xff]  ;;  %v220_v17 = vld [vmem:[#allocation9 + $0x168] sm:$0xff] }
  0x44   :  { %243 = vmatprep.subr.mxu0 %v228_v9  ;;  %314 = vmatprep.subr.mxu1 %v230_v10  ;;  %v222_v18 = vld [vmem:[#allocation9 + $0x178] sm:$0xff]  ;;  %v219_v19 = vld [vmem:[#allocation9 + $0x160] sm:$0xff]  ;;  %v221_v20 = vld [vmem:[#allocation9 + $0x170] sm:$0xff] }
  0x45   :  { %244 = vmatpush1.msra.mxu0 %v227_v11  ;;  %315 = vmatpush1.msra.mxu1 %v229_v12  ;;  %v216_v21 = vld [vmem:[#allocation9 + $0x148] sm:$0xff]  ;;  %v218_v22 = vld [vmem:[#allocation9 + $0x158] sm:$0xff]  ;;  %v215_v23 = vld [vmem:[#allocation9 + $0x140] sm:$0xff] }
  0x46   :  { %245 = vmatprep.subr.mxu0 %v224_v13  ;;  %316 = vmatprep.subr.mxu1 %v226_v14  ;;  %v217_v24 = vld [vmem:[#allocation9 + $0x150] sm:$0xff]  ;;  %v212_v25 = vld [vmem:[#allocation9 + $0x128] sm:$0xff]  ;;  %v214_v26 = vld [vmem:[#allocation9 + $0x138] sm:$0xff] }
  0x47   :  { %246 = vmatpush1.msra.mxu0 %v223_v15  ;;  %317 = vmatpush1.msra.mxu1 %v225_v16  ;;  %v211_v27 = vld [vmem:[#allocation9 + $0x120] sm:$0xff]  ;;  %v213_v28 = vld [vmem:[#allocation9 + $0x130] sm:$0xff]  ;;  %v208_v29 = vld [vmem:[#allocation9 + $0x108] sm:$0xff] }
  0x48   :  { %247 = vmatprep.subr.mxu0 %v220_v17  ;;  %318 = vmatprep.subr.mxu1 %v222_v18  ;;  %v210_v30 = vld [vmem:[#allocation9 + $0x118] sm:$0xff]  ;;  %v207_v31 = vld [vmem:[#allocation9 + $0x100] sm:$0xff]  ;;  %v209_v32 = vld [vmem:[#allocation9 + $0x110] sm:$0xff] }
  0x49   :  { %248 = vmatpush1.msra.mxu0 %v219_v19  ;;  %319 = vmatpush1.msra.mxu1 %v221_v20  ;;  %v204_v33 = vld [vmem:[#allocation9 + $0xe8] sm:$0xff]  ;;  %v206_v34 = vld [vmem:[#allocation9 + $0xf8] sm:$0xff]  ;;  %v203_v35 = vld [vmem:[#allocation9 + $0xe0] sm:$0xff] }
  0x4a   :  { %249 = vmatprep.subr.mxu0 %v216_v21  ;;  %320 = vmatprep.subr.mxu1 %v218_v22  ;;  %v205_v36 = vld [vmem:[#allocation9 + $0xf0] sm:$0xff]  ;;  %v200_v37 = vld [vmem:[#allocation9 + $0xc8] sm:$0xff]  ;;  %v202_v38 = vld [vmem:[#allocation9 + $0xd8] sm:$0xff] }
  0x4b   :  { %250 = vmatpush1.msra.mxu0 %v215_v23  ;;  %321 = vmatpush1.msra.mxu1 %v217_v24  ;;  %v199_v39 = vld [vmem:[#allocation9 + $0xc0] sm:$0xff]  ;;  %v201_v40 = vld [vmem:[#allocation9 + $0xd0] sm:$0xff]  ;;  %v196_v41 = vld [vmem:[#allocation9 + $0xa8] sm:$0xff] }
  0x4c   :  { %251 = vmatprep.subr.mxu0 %v212_v25  ;;  %322 = vmatprep.subr.mxu1 %v214_v26  ;;  %v198_v42 = vld [vmem:[#allocation9 + $0xb8] sm:$0xff]  ;;  %v195_v43 = vld [vmem:[#allocation9 + $0xa0] sm:$0xff]  ;;  %v197_v44 = vld [vmem:[#allocation9 + $0xb0] sm:$0xff] }
  0x4d   :  { %252 = vmatpush1.msra.mxu0 %v211_v27  ;;  %323 = vmatpush1.msra.mxu1 %v213_v28  ;;  %v192_v45 = vld [vmem:[#allocation9 + $0x88] sm:$0xff]  ;;  %v194_v46 = vld [vmem:[#allocation9 + $0x98] sm:$0xff]  ;;  %v191_v47 = vld [vmem:[#allocation9 + $0x80] sm:$0xff] }
  0x4e   :  { %253 = vmatprep.subr.mxu0 %v208_v29  ;;  %324 = vmatprep.subr.mxu1 %v210_v30  ;;  %v193_v48 = vld [vmem:[#allocation9 + $0x90] sm:$0xff]  ;;  %v188_v49 = vld [vmem:[#allocation9 + $0x68] sm:$0xff]  ;;  %v190_v50 = vld [vmem:[#allocation9 + $0x78] sm:$0xff] }
  0x4f   :  { %254 = vmatpush1.msra.mxu0 %v207_v31  ;;  %325 = vmatpush1.msra.mxu1 %v209_v32  ;;  %v187_v51 = vld [vmem:[#allocation9 + $0x60] sm:$0xff]  ;;  %v189_v52 = vld [vmem:[#allocation9 + $0x70] sm:$0xff]  ;;  %v184_v53 = vld [vmem:[#allocation9 + $0x48] sm:$0xff] }
  0x50   :  { %255 = vmatprep.subr.mxu0 %v204_v33  ;;  %326 = vmatprep.subr.mxu1 %v206_v34  ;;  %v186_v54 = vld [vmem:[#allocation9 + $0x58] sm:$0xff]  ;;  %v183_v55 = vld [vmem:[#allocation9 + $0x40] sm:$0xff]  ;;  %v185_v56 = vld [vmem:[#allocation9 + $0x50] sm:$0xff] }
  0x51   :  { %256 = vmatpush1.msra.mxu0 %v203_v35  ;;  %327 = vmatpush1.msra.mxu1 %v205_v36  ;;  %v180_v57 = vld [vmem:[#allocation9 + $0x28] sm:$0xff]  ;;  %v182_v58 = vld [vmem:[#allocation9 + $0x38] sm:$0xff]  ;;  %v179_v59 = vld [vmem:[#allocation9 + $0x20] sm:$0xff] }
  0x52   :  { %257 = vmatprep.subr.mxu0 %v200_v37  ;;  %328 = vmatprep.subr.mxu1 %v202_v38  ;;  %v181_v60 = vld [vmem:[#allocation9 + $0x30] sm:$0xff]  ;;  %v176_v61 = vld [vmem:[#allocation9 + $0x8] sm:$0xff]  ;;  %v178_v62 = vld [vmem:[#allocation9 + $0x18] sm:$0xff] }
  0x53   :  { %258 = vmatpush1.msra.mxu0 %v199_v39  ;;  %329 = vmatpush1.msra.mxu1 %v201_v40  ;;  %v175_v63 = vld [vmem:[#allocation9] sm:$0xff]  ;;  %v177_v1 = vld [vmem:[#allocation9 + $0x10] sm:$0xff]  ;;  %v172_v3 = vld [vmem:[#allocation8 + $0x1e8] sm:$0xff] }
  0x54   :  { %259 = vmatprep.subr.mxu0 %v196_v41  ;;  %330 = vmatprep.subr.mxu1 %v198_v42  ;;  %v104_v2 = vld [vmem:[#allocation3] sm:$0xff]  ;;  %v174_v4 = vld [vmem:[#allocation8 + $0x1f8] sm:$0xff]  ;;  %v171_v5 = vld [vmem:[#allocation8 + $0x1e0] sm:$0xff] }
  0x55   :  { %260 = vmatpush1.msra.mxu0 %v195_v43  ;;  %331 = vmatpush1.msra.mxu1 %v197_v44  ;;  %v173_v6 = vld [vmem:[#allocation8 + $0x1f0] sm:$0xff]  ;;  %v168_v7 = vld [vmem:[#allocation8 + $0x1c8] sm:$0xff]  ;;  %v170_v8 = vld [vmem:[#allocation8 + $0x1d8] sm:$0xff] }
  0x56   :  { %261 = vmatprep.subr.mxu0 %v192_v45  ;;  %332 = vmatprep.subr.mxu1 %v194_v46  ;;  %v167_v9 = vld [vmem:[#allocation8 + $0x1c0] sm:$0xff]  ;;  %v169_v10 = vld [vmem:[#allocation8 + $0x1d0] sm:$0xff]  ;;  %v164_v11 = vld [vmem:[#allocation8 + $0x1a8] sm:$0xff] }
  0x57   :  { %262 = vmatpush1.msra.mxu0 %v191_v47  ;;  %333 = vmatpush1.msra.mxu1 %v193_v48  ;;  %v166_v12 = vld [vmem:[#allocation8 + $0x1b8] sm:$0xff]  ;;  %v163_v13 = vld [vmem:[#allocation8 + $0x1a0] sm:$0xff]  ;;  %v165_v14 = vld [vmem:[#allocation8 + $0x1b0] sm:$0xff] }
  0x58   :  { %263 = vmatprep.subr.mxu0 %v188_v49  ;;  %334 = vmatprep.subr.mxu1 %v190_v50  ;;  %v160_v15 = vld [vmem:[#allocation8 + $0x188] sm:$0xff]  ;;  %v162_v16 = vld [vmem:[#allocation8 + $0x198] sm:$0xff]  ;;  %v159_v17 = vld [vmem:[#allocation8 + $0x180] sm:$0xff] }
  0x59   :  { %264 = vmatpush1.msra.mxu0 %v187_v51  ;;  %335 = vmatpush1.msra.mxu1 %v189_v52  ;;  %v161_v18 = vld [vmem:[#allocation8 + $0x190] sm:$0xff]  ;;  %v156_v19 = vld [vmem:[#allocation8 + $0x168] sm:$0xff]  ;;  %v158_v20 = vld [vmem:[#allocation8 + $0x178] sm:$0xff] }
  0x5a   :  { %265 = vmatprep.subr.mxu0 %v184_v53  ;;  %336 = vmatprep.subr.mxu1 %v186_v54  ;;  %v155_v21 = vld [vmem:[#allocation8 + $0x160] sm:$0xff]  ;;  %v157_v22 = vld [vmem:[#allocation8 + $0x170] sm:$0xff]  ;;  %v152_v23 = vld [vmem:[#allocation8 + $0x148] sm:$0xff] }
  0x5b   :  { %266 = vmatpush1.msra.mxu0 %v183_v55  ;;  %337 = vmatpush1.msra.mxu1 %v185_v56  ;;  %v154_v24 = vld [vmem:[#allocation8 + $0x158] sm:$0xff]  ;;  %v151_v25 = vld [vmem:[#allocation8 + $0x140] sm:$0xff]  ;;  %v153_v26 = vld [vmem:[#allocation8 + $0x150] sm:$0xff] }
  0x5c   :  { %267 = vmatprep.subr.mxu0 %v180_v57  ;;  %338 = vmatprep.subr.mxu1 %v182_v58  ;;  %v148_v27 = vld [vmem:[#allocation8 + $0x128] sm:$0xff]  ;;  %v150_v28 = vld [vmem:[#allocation8 + $0x138] sm:$0xff]  ;;  %v147_v29 = vld [vmem:[#allocation8 + $0x120] sm:$0xff] }
  0x5d   :  { %268 = vmatpush1.msra.mxu0 %v179_v59  ;;  %339 = vmatpush1.msra.mxu1 %v181_v60  ;;  %v149_v30 = vld [vmem:[#allocation8 + $0x130] sm:$0xff]  ;;  %v144_v31 = vld [vmem:[#allocation8 + $0x108] sm:$0xff]  ;;  %v146_v32 = vld [vmem:[#allocation8 + $0x118] sm:$0xff] }
  0x5e   :  { %269 = vmatprep.subr.mxu0 %v176_v61  ;;  %340 = vmatprep.subr.mxu1 %v178_v62  ;;  %v143_v33 = vld [vmem:[#allocation8 + $0x100] sm:$0xff]  ;;  %v145_v34 = vld [vmem:[#allocation8 + $0x110] sm:$0xff]  ;;  %v140_v35 = vld [vmem:[#allocation8 + $0xe8] sm:$0xff] }
  0x5f   :  { %270 = vmatpush1.msra.mxu0 %v175_v63  ;;  %341 = vmatpush1.msra.mxu1 %v177_v1  ;;  %v142_v36 = vld [vmem:[#allocation8 + $0xf8] sm:$0xff]  ;;  %v139_v37 = vld [vmem:[#allocation8 + $0xe0] sm:$0xff]  ;;  %v141_v38 = vld [vmem:[#allocation8 + $0xf0] sm:$0xff] }
  0x60   :  { %304 = vmatmul.mubr.f32.vlgmr.msra.gmra.mxu0 %v104_v2  ;;  %381 = vmatprep.subr.mxu0 %v172_v3  ;;  %v136_v39 = vld [vmem:[#allocation8 + $0xc8] sm:$0xff]  ;;  %v138_v40 = vld [vmem:[#allocation8 + $0xd8] sm:$0xff]  ;;  %v135_v41 = vld [vmem:[#allocation8 + $0xc0] sm:$0xff] }
  0x61   :  { %452 = vmatprep.subr.mxu1 %v174_v4  ;;  %375 = vmatmul.mubr.f32.vlgmr.msra.gmra.mxu1 %v104_v2  ;;  %v137_v42 = vld [vmem:[#allocation8 + $0xd0] sm:$0xff]  ;;  %v132_v43 = vld [vmem:[#allocation8 + $0xa8] sm:$0xff]  ;;  %v134_v44 = vld [vmem:[#allocation8 + $0xb8] sm:$0xff] }
  0x62   :  { %382 = vmatpush1.msra.mxu0 %v171_v5  ;;  %453 = vmatpush1.msra.mxu1 %v173_v6  ;;  %v131_v45 = vld [vmem:[#allocation8 + $0xa0] sm:$0xff]  ;;  %v133_v46 = vld [vmem:[#allocation8 + $0xb0] sm:$0xff]  ;;  %v128_v47 = vld [vmem:[#allocation8 + $0x88] sm:$0xff] }
  0x63   :  { %383 = vmatprep.subr.mxu0 %v168_v7  ;;  %454 = vmatprep.subr.mxu1 %v170_v8  ;;  %v130_v48 = vld [vmem:[#allocation8 + $0x98] sm:$0xff]  ;;  %v127_v49 = vld [vmem:[#allocation8 + $0x80] sm:$0xff]  ;;  %v129_v50 = vld [vmem:[#allocation8 + $0x90] sm:$0xff] }
  0x64   :  { %384 = vmatpush1.msra.mxu0 %v167_v9  ;;  %455 = vmatpush1.msra.mxu1 %v169_v10  ;;  %v124_v51 = vld [vmem:[#allocation8 + $0x68] sm:$0xff]  ;;  %v126_v52 = vld [vmem:[#allocation8 + $0x78] sm:$0xff]  ;;  %v123_v53 = vld [vmem:[#allocation8 + $0x60] sm:$0xff] }
  0x65   :  { %385 = vmatprep.subr.mxu0 %v164_v11  ;;  %456 = vmatprep.subr.mxu1 %v166_v12  ;;  %v125_v54 = vld [vmem:[#allocation8 + $0x70] sm:$0xff]  ;;  %v120_v55 = vld [vmem:[#allocation8 + $0x48] sm:$0xff]  ;;  %v122_v56 = vld [vmem:[#allocation8 + $0x58] sm:$0xff] }
  0x66   :  { %386 = vmatpush1.msra.mxu0 %v163_v13  ;;  %457 = vmatpush1.msra.mxu1 %v165_v14  ;;  %v119_v57 = vld [vmem:[#allocation8 + $0x40] sm:$0xff]  ;;  %v121_v58 = vld [vmem:[#allocation8 + $0x50] sm:$0xff]  ;;  %v116_v59 = vld [vmem:[#allocation8 + $0x28] sm:$0xff] }
  0x67   :  { %387 = vmatprep.subr.mxu0 %v160_v15  ;;  %458 = vmatprep.subr.mxu1 %v162_v16  ;;  %v118_v60 = vld [vmem:[#allocation8 + $0x38] sm:$0xff]  ;;  %v115_v61 = vld [vmem:[#allocation8 + $0x20] sm:$0xff]  ;;  %v117_v62 = vld [vmem:[#allocation8 + $0x30] sm:$0xff] }
  0x68   :  { %388 = vmatpush1.msra.mxu0 %v159_v17  ;;  %459 = vmatpush1.msra.mxu1 %v161_v18  ;;  %v112_v63 = vld [vmem:[#allocation8 + $0x8] sm:$0xff]  ;;  %v114_v1 = vld [vmem:[#allocation8 + $0x18] sm:$0xff]  ;;  %v111_v2 = vld [vmem:[#allocation8] sm:$0xff] }
  0x69   :  { %389 = vmatprep.subr.mxu0 %v156_v19  ;;  %460 = vmatprep.subr.mxu1 %v158_v20  ;;  %v113_v3 = vld [vmem:[#allocation8 + $0x10] sm:$0xff]  ;;  %v588_v5 = vld [vmem:[#allocation11 + $0x78] sm:$0xff]  ;;  %v586_v7 = vld [vmem:[#allocation11 + $0x68] sm:$0xff] }
  0x6a   :  { %390 = vmatpush1.msra.mxu0 %v155_v21  ;;  %461 = vmatpush1.msra.mxu1 %v157_v22  ;;  %v102_v4 = vld [vmem:[%s1093_s0] sm:$0xff]  ;;  %v585_v8 = vld [vmem:[#allocation11 + $0x60] sm:$0xff]  ;;  %v584_v9 = vld [vmem:[#allocation11 + $0x58] sm:$0xff]  ;;  %v525_v21 = vlaneseq }
  0x6b   :  { %391 = vmatprep.subr.mxu0 %v152_v23  ;;  %462 = vmatprep.subr.mxu1 %v154_v24  ;;  %v587_v6 = vld [vmem:[#allocation11 + $0x70] sm:$0xff]  ;;  %v582_v11 = vld [vmem:[#allocation11 + $0x48] sm:$0xff]  ;;  %v581_v12 = vld [vmem:[#allocation11 + $0x40] sm:$0xff] }
  0x6c   :  { %392 = vmatpush1.msra.mxu0 %v151_v25  ;;  %463 = vmatpush1.msra.mxu1 %v153_v26  ;;  %v583_v10 = vld [vmem:[#allocation11 + $0x50] sm:$0xff]  ;;  %v580_v13 = vld [vmem:[#allocation11 + $0x38] sm:$0xff]  ;;  %v578_v15 = vld [vmem:[#allocation11 + $0x28] sm:$0xff]  ;;  %v526_v22 = vshrl.u32 %v525_v21, 7 }
  0x6d   :  { %393 = vmatprep.subr.mxu0 %v148_v27  ;;  %464 = vmatprep.subr.mxu1 %v150_v28  ;;  %v579_v14 = vld [vmem:[#allocation11 + $0x30] sm:$0xff]  ;;  %v577_v16 = vld [vmem:[#allocation11 + $0x20] sm:$0xff]  ;;  %v576_v17 = vld [vmem:[#allocation11 + $0x18] sm:$0xff] }
  0x6e   :  { %394 = vmatpush1.msra.mxu0 %v147_v29  ;;  %465 = vmatpush1.msra.mxu1 %v149_v30  ;;  %v575_v18 = vld [vmem:[#allocation11 + $0x10] sm:$0xff]  ;;  %v574_v19 = vld [vmem:[#allocation11 + $0x8] sm:$0xff]  ;;  %v573_v20 = vld [vmem:[#allocation11] sm:$0xff]  ;;  %v527_v24 = vsub.s32 0, %v526_v22  ;;  %v531_v27 = vsub.s32 1, %v526_v22 }
  0x6f   :  { %395 = vmatprep.subr.mxu0 %v144_v31  ;;  %466 = vmatprep.subr.mxu1 %v146_v32  ;;  %v523_v25 = vld [vmem:[%s1098_s5] sm:$0xf]  ;;  %s981_s5 = smov [#allocation13]  }
  0x70   :  { %396 = vmatpush1.msra.mxu0 %v143_v33  ;;  %467 = vmatpush1.msra.mxu1 %v145_v34  ;;  %v528_v29 = vrot.slane %v523_v25, %v527_v24  ;;  %v532_v33 = vrot.slane %v523_v25, %v531_v27  ;;  %s686_s20 = sshll.u32 %s981_s5, 4  ;;  %s687_s20 = int_to_ptr.vmem [resolvable:$true] %s686_s20 }
  0x71   :  { %397 = vmatprep.subr.mxu0 %v140_v35  ;;  %468 = vmatprep.subr.mxu1 %v142_v36  ;;  %s900_s21 = scalar_lea.vmem %s687_s20, 128  ;;  %p905_p12 = scmp.lt.s32.totalorder %s687_s20, %s687_s20 }
  0x72   :  { %398 = vmatpush1.msra.mxu0 %v139_v37  ;;  %469 = vmatpush1.msra.mxu1 %v141_v38  ;;  %p901_p11 = scmp.ne.s32.totalorder %s687_s20, %s900_s21  ;;  %p906_p13 = scmp.lt.s32.totalorder %s900_s21, %s900_s21 }
  0x73   :  { %399 = vmatprep.subr.mxu0 %v136_v39  ;;  %470 = vmatprep.subr.mxu1 %v138_v40  ;;  %v539_v39 = vsub.s32 3, %v526_v22 }
  0x74   :  { %400 = vmatpush1.msra.mxu0 %v135_v41  ;;  %471 = vmatpush1.msra.mxu1 %v137_v42  ;;  %p907_p0 = por %p906_p13, %p905_p12 }
  0x75   :  { %401 = vmatprep.subr.mxu0 %v132_v43  ;;  %472 = vmatprep.subr.mxu1 %v134_v44  ;;  %v540_v43 = vrot.slane %v523_v25, %v539_v39  ;;  %v535_v44 = vsub.s32 2, %v526_v22 }
  0x76   :  { %402 = vmatpush1.msra.mxu0 %v131_v45  ;;  %473 = vmatpush1.msra.mxu1 %v133_v46  ;;  %p908_p1 = pnand %p907_p0, %p901_p11 }
  0x77   :  { %403 = vmatprep.subr.mxu0 %v128_v47  ;;  %474 = vmatprep.subr.mxu1 %v130_v48  ;;  %v536_v47 = vrot.slane %v523_v25, %v535_v44 }
  0x78   :  { %404 = vmatpush1.msra.mxu0 %v127_v49  ;;  %475 = vmatpush1.msra.mxu1 %v129_v50 }
  0x79   :  { %405 = vmatprep.subr.mxu0 %v124_v51  ;;  %476 = vmatprep.subr.mxu1 %v126_v52 }
  0x7a   :  { %406 = vmatpush1.msra.mxu0 %v123_v53  ;;  %477 = vmatpush1.msra.mxu1 %v125_v54 }
  0x7b   :  { %407 = vmatprep.subr.mxu0 %v120_v55  ;;  %478 = vmatprep.subr.mxu1 %v122_v56  ;;  %v106_v56 = vld [vmem:[#allocation6] sm:$0xff] }
  0x7c   :  { %408 = vmatpush1.msra.mxu0 %v119_v57  ;;  %479 = vmatpush1.msra.mxu1 %v121_v58 }
  0x7d   :  { %409 = vmatprep.subr.mxu0 %v116_v59  ;;  %480 = vmatprep.subr.mxu1 %v118_v60 }
  0x7e   :  { %410 = vmatpush1.msra.mxu0 %v115_v61  ;;  %481 = vmatpush1.msra.mxu1 %v117_v62 }
  0x7f   :  { %411 = vmatprep.subr.mxu0 %v112_v63  ;;  %482 = vmatprep.subr.mxu1 %v114_v1 }
  0x80   :  { %412 = vmatpush1.msra.mxu0 %v111_v2  ;;  %445 = vmatprep.mubr.f32.mxu0 %v979_v0 }
  0x81   :  { %483 = vmatpush1.msra.mxu1 %v113_v3  ;;  %516 = vmatprep.mubr.f32.mxu1 %v979_v0 }
  0x82   :  { %446 = vmatmul.mubr.f32.vlgmr.msra.gmra.mxu0 %v102_v4  ;;  %517 = vmatmul.mubr.f32.vlgmr.msra.gmra.mxu1 %v102_v4 }
  0x83   :  { %735 = vmatprep.subr.mxu0 %v979_v0  ;;  %767 = vmatprep.mubr.msk.f32.mxu0 %vm980_vm0, %v979_v0 }
  0x84   :  { %736 = vmatpush3.msra.mxu0 %v588_v5 }
  0x85   :  { %737 = vmatprep.subr.mxu0 %v979_v0 }
  0x86   :  { %738 = vmatpush3.msra.mxu0 %v587_v6 }
  0x87   :  { %739 = vmatprep.subr.mxu0 %v979_v0 }
  0x88   :  { %740 = vmatpush3.msra.mxu0 %v586_v7 }
  0x89   :  { %741 = vmatprep.subr.mxu0 %v979_v0 }
  0x8a   :  { %742 = vmatpush3.msra.mxu0 %v585_v8 }
  0x8b   :  { %743 = vmatprep.subr.mxu0 %v979_v0 }
  0x8c   :  { %744 = vmatpush3.msra.mxu0 %v584_v9 }
  0x8d   :  { %745 = vmatprep.subr.mxu0 %v979_v0 }
  0x8e   :  { %746 = vmatpush3.msra.mxu0 %v583_v10 }
  0x8f   :  { %747 = vmatprep.subr.mxu0 %v979_v0 }
  0x90   :  { %748 = vmatpush3.msra.mxu0 %v582_v11 }
  0x91   :  { %749 = vmatprep.subr.mxu0 %v979_v0 }
  0x92   :  { %750 = vmatpush3.msra.mxu0 %v581_v12 }
  0x93   :  { %751 = vmatprep.subr.mxu0 %v979_v0 }
  0x94   :  { %752 = vmatpush3.msra.mxu0 %v580_v13 }
  0x95   :  { %753 = vmatprep.subr.mxu0 %v979_v0 }
  0x96   :  { %754 = vmatpush3.msra.mxu0 %v579_v14 }
  0x97   :  { %755 = vmatprep.subr.mxu0 %v979_v0 }
  0x98   :  { %756 = vmatpush3.msra.mxu0 %v578_v15 }
  0x99   :  { %757 = vmatprep.subr.mxu0 %v979_v0 }
  0x9a   :  { %758 = vmatpush3.msra.mxu0 %v577_v16 }
  0x9b   :  { %759 = vmatprep.subr.mxu0 %v979_v0 }
  0x9c   :  { %760 = vmatpush3.msra.mxu0 %v576_v17 }
  0x9d   :  { %761 = vmatprep.subr.mxu0 %v979_v0 }
  0x9e   :  { %762 = vmatpush3.msra.mxu0 %v575_v18 }
  0x9f   :  { %763 = vmatprep.subr.mxu0 %v979_v0 }
  0xa0   :  { %764 = vmatpush3.msra.mxu0 %v574_v19 }
  0xa1   :  { %765 = vmatprep.subr.mxu0 %v979_v0 }
  0xa2   :  { %766 = vmatpush3.msra.mxu0 %v573_v20 }
 0x120   :  { %v305_v23 = vpop.f32.mrf.mxu0 }
 0x121   :  { %v376_v26 = vpop.f32.mrf.mxu1 }
 0x122   :  { %v307_v28 = vpop.f32.mrf.mxu0 }
 0x123   :  { %v378_v31 = vpop.f32.mrf.mxu1 }
 0x142   :  { %v447_v30 = vpop.f32.mrf.mxu0  ;;  %v518_v0 = vpop.f32.mrf.mxu1 }
 0x143   :  { %v448_v32 = vadd.f32 %v447_v30, %v305_v23  ;;  %v519_v46 = vadd.f32 %v518_v0, %v376_v26 }
 0x144   :  { %v449_v34 = vpop.f32.mrf.mxu0  ;;  %v520_v41 = vpop.f32.mrf.mxu1 }
 0x145   :  { %v545_v35 = vadd.f32 %v528_v29, %v448_v32  ;;  %v450_v36 = vadd.f32 %v449_v34, %v307_v28  ;;  %v521_v42 = vadd.f32 %v520_v41, %v378_v31  ;;  %v547_v50 = vadd.f32 %v536_v47, %v519_v46 }
 0x147   :  { %v714_v37 = vmul.f32 -1.442695, %v545_v35  ;;  %v546_v38 = vadd.f32 %v532_v33, %v450_v36  ;;  %v548_v45 = vadd.f32 %v540_v43, %v521_v42 }
 0x149   :  { %784 = vpow2.f32 %v714_v37  ;;  %v715_v40 = vmul.f32 -1.442695, %v546_v38  ;;  %v716_v48 = vmul.f32 -1.442695, %v548_v45 }
 0x14b   :  { %786 = vpow2.f32 %v715_v40 }
 0x14c   :  { %788 = vpow2.f32 %v716_v48 }
 0x156   :  { %v785_v49 = vpop.eup %784 }
 0x157   :  { %v552_v51 = vadd.f32 1.0, %v785_v49 }
 0x158   :  { %v787_v52 = vpop.eup %786 }
 0x159   :  { %790 = vrcp.f32 %v552_v51  ;;  %v558_v53 = vadd.f32 1.0, %v787_v52  ;;  %v789_v54 = vpop.eup %788 }
 0x15a   :  { %792 = vtanh.f32 %v547_v50  ;;  %v565_v59 = vadd.f32 1.0, %v789_v54 }
 0x15b   :  { %794 = vrcp.f32 %v558_v53 }
 0x15c   :  { %796 = vrcp.f32 %v565_v59 }
 0x166   :  { %v791_v55 = vpop.eup %790 }
 0x167   :  { %v793_v57 = vpop.eup %792 }
 0x168   :  { %v795_v58 = vpop.eup %794  ;;  %v569_v60 = vmul.f32 %v793_v57, %v791_v55 }
 0x169   :  { %v568_v61 = vmul.f32 %v795_v58, %v106_v56  ;;  %v797_v63 = vpop.eup %796 }
 0x16b   :  { %v570_v62 = vadd.f32 %v569_v60, %v568_v61 }
 0x16d   :  { %798 = vtanh.f32 %v570_v62  ;;  %669 = vst [vmem:[#allocation15] sm:$0xff] %v570_v62 }
 0x17a   :  { %v799_v1 = vpop.eup %798 }
 0x17b   :  { %v572_v2 = vmul.f32 %v799_v1, %v797_v63 }
 0x17d   :  { %768 = vmatmul.mubr.f32.vlgmr.msra.gmra.mxu0 %v572_v2  ;;  %668 = vst [vmem:[#allocation13] sm:$0xff] %v572_v2 }
 0x17e   :  { %911 = shalt.err (!%p908_p1)
}
 0x17f   :  { %689 = dma.vmem_to_hbm [thread:$0]  %s687_s20, 128, %s1102_s9, [#allocation14]  }
 0x180   :  { %s982_s24 = smov [#allocation15]  }
 0x181   :  { %s696_s25 = sshll.u32 %s982_s24, 4  ;;  %s697_s25 = int_to_ptr.vmem [resolvable:$true] %s696_s25 }
 0x182   :  { %s920_s26 = scalar_lea.vmem %s697_s25, 128  ;;  %p925_p3 = scmp.lt.s32.totalorder %s697_s25, %s697_s25 }
 0x183   :  { %p921_p2 = scmp.ne.s32.totalorder %s697_s25, %s920_s26  ;;  %p926_p4 = scmp.lt.s32.totalorder %s920_s26, %s920_s26 }
 0x185   :  { %p927_p5 = por %p926_p4, %p925_p3 }
 0x187   :  { %p928_p6 = pnand %p927_p5, %p921_p2 }
 0x189   :  { %931 = shalt.err (!%p928_p6)
}
 0x18a   :  { %699 = dma.vmem_to_hbm [thread:$0]  %s697_s25, 128, %s1103_s10, [#allocation14]   ;;  %v717_v3 = vld [vmem:[%s1100_s7] ss:$0 sm:$0xff] }
 0x18b   :  { %s983_s30 = smov [#allocation12]  }
 0x18c   :  { %s676_s9 = sshll.u32 %s983_s30, 4  ;;  %s677_s9 = int_to_ptr.vmem [resolvable:$true] %s676_s9 }
 0x18d   :  { %s940_s11 = scalar_lea.vmem %s677_s9, 128  ;;  %p945_p8 = scmp.lt.s32.totalorder %s677_s9, %s677_s9 }
 0x18e   :  { %p941_p7 = scmp.ne.s32.totalorder %s677_s9, %s940_s11  ;;  %p946_p9 = scmp.lt.s32.totalorder %s940_s11, %s940_s11 }
 0x190   :  { %p947_p10 = por %p946_p9, %p945_p8 }
 0x192   :  { %p948_p11 = pnand %p947_p10, %p941_p7 }
 0x23d   :  { %v662_v4 = vpop.f32.mrf.mxu0 }
 0x23e   :  { %v663_v5 = vadd.f32 %v717_v3, %v662_v4 }
 0x23f   :  { %v769_v6 = vpop.f32.mrf.mxu0 }
 0x240   :  { %666 = vst [vmem:[#allocation12] sm:$0xff] %v663_v5 }
 0x241   :  { %951 = shalt.err (!%p948_p11)
}
 0x242   :  { %679 = dma.vmem_to_hbm [thread:$0]  %s677_s9, 128, %s1101_s8, [#allocation5]  }
 0x243   :  { %966 = dma.done.wait [#allocation5], 128  }
 0x244   :  { %967 = vsyncadd [#allocation5], 4294967168 }
 0x245   :  { %968 = dma.done.wait [#allocation14], 256  }
 0x246   :  { %969 = vsyncadd [#allocation14], 4294967040 }
 0x247   :  { %709 = vsyncpa [#allocation4], 1 }
 0x248   :  { %710 = vsyncpa [#allocation7], 1 }
 0x249   :  { %711 = vsyncpa [#allocation10], 1 }
 0x24a   :  { %712 = vsyncpa [#allocation5], 1 }
 0x24b   :  { %713 = vsyncpa [#allocation14], 1 }

</bundles_post_ra>
